<compile_context>
chip_gen: v6e
topology: v6e:2x2x1
jax: 0.10.0
libtpu: 0.0.40
codegen_flags: <defaults>
</compile_context>

<pallas_src>
import jax
import jax.numpy as jnp
from jax.experimental import pallas as pl
from jax.experimental.pallas import tpu as pltpu

PAD = 128          # lane-dense width for all padded feature dims
HIDDEN = 64        # logical hidden width of the torch model
NUM_LAYERS = 4


def dqn_kernel(x_ref, w_ref, b_ref, o_ref):
    """Fused 4x (matmul + bias + ReLU). All tiles are lane-dense [*, 128].

    x_ref: (tile_b, 128) bf16      padded input activations
    w_ref: (4, 128, 128) bf16      packed, zero-padded weight stack [in, out]
    b_ref: (4, 1, 128)  f32        packed, zero-padded biases
    o_ref: (tile_b, 128) f32       padded output (sliced to num_actions outside)
    """
    h = x_ref[...]                                   # bf16
    for li in range(NUM_LAYERS):                     # static unroll
        acc = jnp.dot(h, w_ref[li], preferred_element_type=jnp.float32)
        acc = jnp.maximum(acc + b_ref[li], 0.0)      # bias (f32) + ReLU
        h = acc if li == NUM_LAYERS - 1 else acc.astype(jnp.bfloat16)
    o_ref[...] = h                                   # f32, unmasked lane-dense store


def dqn_forward(x, w_packed, b_packed, num_actions, *, tile_b=128):
    """x: (B, num_states) f32. Returns (B, num_actions) f32 Q-values."""
    B, num_states = x.shape
    pad = w_packed.shape[-1]
    assert num_states <= pad and num_actions <= pad

    # Pad batch to a tile multiple and features to the lane-dense width; bf16 activations.
    n_tiles = pl.cdiv(B, tile_b)
    b_pad = n_tiles * tile_b
    x_p = jnp.zeros((b_pad, pad), jnp.bfloat16).at[:B, :num_states].set(
        x.astype(jnp.bfloat16))

    out_padded = pl.pallas_call(
        dqn_kernel,
        out_shape=jax.ShapeDtypeStruct((b_pad, pad), jnp.float32),
        grid_spec=pltpu.PrefetchScalarGridSpec(
            num_scalar_prefetch=0,
            grid=(n_tiles,),
            in_specs=[
                pl.BlockSpec((tile_b, pad), lambda i: (i, 0)),           # x tile
                pl.BlockSpec(w_packed.shape, lambda i: (0, 0, 0)),       # packed W (resident)
                pl.BlockSpec(b_packed.shape, lambda i: (0, 0, 0)),       # packed b (resident)
            ],
            out_specs=pl.BlockSpec((tile_b, pad), lambda i: (i, 0)),
        ),
        compiler_params=pltpu.CompilerParams(
            dimension_semantics=("parallel",)),  # batch tiles shard across v7x's 2 TCs
    )(x_p, w_packed, b_packed)

    # Wrapper-side slice back to the logical shape (layout plumbing, not compute).
    return out_padded[:B, :num_actions]


def init_dqn_params(key, num_states, num_actions, hidden=HIDDEN):
    """Deterministic init mimicking torch nn.Linear default (uniform +-1/sqrt(fan_in)).

    Weights stored as [in_features, out_features] (transpose of torch's [out, in])
    so the kernel computes y = relu(x @ W + b) directly.
    """
    dims = [(num_states, hidden), (hidden, hidden), (hidden, hidden), (hidden, num_actions)]
    params = {}
    for li, (fan_in, fan_out) in enumerate(dims, start=1):
        key, kw, kb = jax.random.split(key, 3)
        bound = 1.0 / (fan_in ** 0.5)
        params[f"w{li}"] = jax.random.uniform(
            kw, (fan_in, fan_out), jnp.float32, -bound, bound)
        params[f"b{li}"] = jax.random.uniform(
            kb, (fan_out,), jnp.float32, -bound, bound)
    return params


def pack_params(params, num_states, num_actions, hidden=HIDDEN, pad=PAD):
    """Zero-pad every layer to [pad, pad] and stack: W (4,pad,pad) bf16, b (4,1,pad) f32.

    Zero padding keeps the math exact: padded input columns are 0, padded hidden
    units are relu(0 + 0) = 0, padded output columns are sliced off.
    """
    dims = [(num_states, hidden), (hidden, hidden), (hidden, hidden), (hidden, num_actions)]
    w_stack, b_stack = [], []
    for li, (fan_in, fan_out) in enumerate(dims, start=1):
        w = jnp.zeros((pad, pad), jnp.float32).at[:fan_in, :fan_out].set(params[f"w{li}"])
        b = jnp.zeros((1, pad), jnp.float32).at[0, :fan_out].set(params[f"b{li}"])
        w_stack.append(w)
        b_stack.append(b)
    w_packed = jnp.stack(w_stack).astype(jnp.bfloat16)   # (4, 128, 128) bf16
    b_packed = jnp.stack(b_stack)                         # (4, 1, 128)  f32
    return w_packed, b_packed


def dqn_reference(x, params):
    """Pure f32 reference matching the torch module (ReLU after every Linear)."""
    h = x
    for li in range(1, NUM_LAYERS + 1):
        h = jnp.maximum(h @ params[f"w{li}"] + params[f"b{li}"], 0.0)
    return h


if __name__ == "__main__":
    num_states, num_actions = 16, 4
    batch = 200          # deliberately NOT a multiple of tile_b: exercises cdiv + padding
    tile_b = 128         # -> grid = 2 (allows v7x dual-TC sharding)

    key = jax.random.PRNGKey(0)
    key, kx = jax.random.split(key)
    x = jax.random.normal(kx, (batch, num_states), jnp.float32)

    params = init_dqn_params(key, num_states, num_actions)
    w_packed, b_packed = pack_params(params, num_states, num_actions)

    out = dqn_forward(x, w_packed, b_packed, num_actions, tile_b=tile_b)
    out = jax.block_until_ready(out)

    ref = dqn_reference(x, params)
    assert out.shape == (batch, num_actions)
    # bf16 weights/activations with f32 accumulation -> loose tolerance vs f32 reference.
    assert jnp.allclose(out, ref, atol=3e-2, rtol=3e-2), "mismatch vs reference"

    print("KERNEL_OK")
</pallas_src>

<mosaic_0001>
module attributes {stable_mosaic.version = 11 : i64} {
  func.func @dqn_kernel(%arg0: i32, %arg1: memref<128x128xbf16, #tpu.memory_space<vmem>>, %arg2: memref<4x128x128xbf16, #tpu.memory_space<vmem>>, %arg3: memref<4x1x128xf32, #tpu.memory_space<vmem>>, %arg4: memref<128x128xf32, #tpu.memory_space<vmem>>) attributes {dimension_semantics = [#tpu.dimension_semantics<parallel>], iteration_bounds = array<i64: 2>, scalar_prefetch = 0 : i64, scratch_operands = 0 : i64, tpu.core_type = #tpu.core_type<tc>, window_params = [{transform_indices = @transform_0, window_bounds = array<i64: 128, 128>}, {pipeline_mode = #tpu.pipeline_mode<synchronous>, transform_indices = @transform_1, window_bounds = array<i64: 4, 128, 128>}, {pipeline_mode = #tpu.pipeline_mode<synchronous>, transform_indices = @transform_2, window_bounds = array<i64: 4, 1, 128>}, {transform_indices = @transform_3, window_bounds = array<i64: 128, 128>}]} {
    %c0 = arith.constant 0 : index
    %c0_0 = arith.constant 0 : index
    %0 = vector.load %arg1[%c0, %c0_0] : memref<128x128xbf16, #tpu.memory_space<vmem>>, vector<128x128xbf16>
    %c0_1 = arith.constant 0 : index
    %c0_2 = arith.constant 0 : index
    %c0_3 = arith.constant 0 : index
    %1 = vector.load %arg2[%c0_1, %c0_2, %c0_3] : memref<4x128x128xbf16, #tpu.memory_space<vmem>>, vector<1x128x128xbf16>
    %2 = vector.shape_cast %1 : vector<1x128x128xbf16> to vector<128x128xbf16>
    %cst = arith.constant dense<0.000000e+00> : vector<128x128xf32>
    %3 = tpu.matmul %0, %2, %cst {dimension_numbers = #tpu.dot_dimension_numbers<[1], [0], [0], [1], [0, 0, 1, 1], [], []>} : vector<128x128xbf16>, vector<128x128xbf16>, vector<128x128xf32> -> vector<128x128xf32>
    %c0_4 = arith.constant 0 : index
    %c0_5 = arith.constant 0 : index
    %c0_6 = arith.constant 0 : index
    %4 = vector.load %arg3[%c0_4, %c0_5, %c0_6] : memref<4x1x128xf32, #tpu.memory_space<vmem>>, vector<1x1x128xf32>
    %5 = vector.shape_cast %4 : vector<1x1x128xf32> to vector<1x128xf32>
    %6 = vector.broadcast %5 : vector<1x128xf32> to vector<128x128xf32>
    %7 = arith.addf %3, %6 : vector<128x128xf32>
    %cst_7 = arith.constant 0.000000e+00 : f32
    %8 = vector.broadcast %cst_7 : f32 to vector<128x128xf32>
    %9 = arith.maximumf %7, %8 : vector<128x128xf32>
    %10 = arith.truncf %9 : vector<128x128xf32> to vector<128x128xbf16>
    %c1 = arith.constant 1 : index
    %c0_8 = arith.constant 0 : index
    %c0_9 = arith.constant 0 : index
    %11 = vector.load %arg2[%c1, %c0_8, %c0_9] : memref<4x128x128xbf16, #tpu.memory_space<vmem>>, vector<1x128x128xbf16>
    %12 = vector.shape_cast %11 : vector<1x128x128xbf16> to vector<128x128xbf16>
    %cst_10 = arith.constant dense<0.000000e+00> : vector<128x128xf32>
    %13 = tpu.matmul %10, %12, %cst_10 {dimension_numbers = #tpu.dot_dimension_numbers<[1], [0], [0], [1], [0, 0, 1, 1], [], []>} : vector<128x128xbf16>, vector<128x128xbf16>, vector<128x128xf32> -> vector<128x128xf32>
    %c1_11 = arith.constant 1 : index
    %c0_12 = arith.constant 0 : index
    %c0_13 = arith.constant 0 : index
    %14 = vector.load %arg3[%c1_11, %c0_12, %c0_13] : memref<4x1x128xf32, #tpu.memory_space<vmem>>, vector<1x1x128xf32>
    %15 = vector.shape_cast %14 : vector<1x1x128xf32> to vector<1x128xf32>
    %16 = vector.broadcast %15 : vector<1x128xf32> to vector<128x128xf32>
    %17 = arith.addf %13, %16 : vector<128x128xf32>
    %cst_14 = arith.constant 0.000000e+00 : f32
    %18 = vector.broadcast %cst_14 : f32 to vector<128x128xf32>
    %19 = arith.maximumf %17, %18 : vector<128x128xf32>
    %20 = arith.truncf %19 : vector<128x128xf32> to vector<128x128xbf16>
    %c2 = arith.constant 2 : index
    %c0_15 = arith.constant 0 : index
    %c0_16 = arith.constant 0 : index
    %21 = vector.load %arg2[%c2, %c0_15, %c0_16] : memref<4x128x128xbf16, #tpu.memory_space<vmem>>, vector<1x128x128xbf16>
    %22 = vector.shape_cast %21 : vector<1x128x128xbf16> to vector<128x128xbf16>
    %cst_17 = arith.constant dense<0.000000e+00> : vector<128x128xf32>
    %23 = tpu.matmul %20, %22, %cst_17 {dimension_numbers = #tpu.dot_dimension_numbers<[1], [0], [0], [1], [0, 0, 1, 1], [], []>} : vector<128x128xbf16>, vector<128x128xbf16>, vector<128x128xf32> -> vector<128x128xf32>
    %c2_18 = arith.constant 2 : index
    %c0_19 = arith.constant 0 : index
    %c0_20 = arith.constant 0 : index
    %24 = vector.load %arg3[%c2_18, %c0_19, %c0_20] : memref<4x1x128xf32, #tpu.memory_space<vmem>>, vector<1x1x128xf32>
    %25 = vector.shape_cast %24 : vector<1x1x128xf32> to vector<1x128xf32>
    %26 = vector.broadcast %25 : vector<1x128xf32> to vector<128x128xf32>
    %27 = arith.addf %23, %26 : vector<128x128xf32>
    %cst_21 = arith.constant 0.000000e+00 : f32
    %28 = vector.broadcast %cst_21 : f32 to vector<128x128xf32>
    %29 = arith.maximumf %27, %28 : vector<128x128xf32>
    %30 = arith.truncf %29 : vector<128x128xf32> to vector<128x128xbf16>
    %c3 = arith.constant 3 : index
    %c0_22 = arith.constant 0 : index
    %c0_23 = arith.constant 0 : index
    %31 = vector.load %arg2[%c3, %c0_22, %c0_23] : memref<4x128x128xbf16, #tpu.memory_space<vmem>>, vector<1x128x128xbf16>
    %32 = vector.shape_cast %31 : vector<1x128x128xbf16> to vector<128x128xbf16>
    %cst_24 = arith.constant dense<0.000000e+00> : vector<128x128xf32>
    %33 = tpu.matmul %30, %32, %cst_24 {dimension_numbers = #tpu.dot_dimension_numbers<[1], [0], [0], [1], [0, 0, 1, 1], [], []>} : vector<128x128xbf16>, vector<128x128xbf16>, vector<128x128xf32> -> vector<128x128xf32>
    %c3_25 = arith.constant 3 : index
    %c0_26 = arith.constant 0 : index
    %c0_27 = arith.constant 0 : index
    %34 = vector.load %arg3[%c3_25, %c0_26, %c0_27] : memref<4x1x128xf32, #tpu.memory_space<vmem>>, vector<1x1x128xf32>
    %35 = vector.shape_cast %34 : vector<1x1x128xf32> to vector<1x128xf32>
    %36 = vector.broadcast %35 : vector<1x128xf32> to vector<128x128xf32>
    %37 = arith.addf %33, %36 : vector<128x128xf32>
    %cst_28 = arith.constant 0.000000e+00 : f32
    %38 = vector.broadcast %cst_28 : f32 to vector<128x128xf32>
    %39 = arith.maximumf %37, %38 : vector<128x128xf32>
    %c0_29 = arith.constant 0 : index
    %c0_30 = arith.constant 0 : index
    %40 = vector.load %arg4[%c0_29, %c0_30] : memref<128x128xf32, #tpu.memory_space<vmem>>, vector<128x128xf32>
    tpu.vector_store %arg4[%c0_29, %c0_30], %39 {strides = array<i32>} : memref<128x128xf32, #tpu.memory_space<vmem>>, vector<128x128xf32>,
    return
  }
  func.func @transform_0(%arg0: i32) -> (i32, i32) {
    %c0_i32 = arith.constant 0 : i32
    %c0_i32_0 = arith.constant 0 : i32
    return %arg0, %c0_i32 : i32, i32
  }
  func.func @transform_1(%arg0: i32) -> (i32, i32, i32) {
    %c0_i32 = arith.constant 0 : i32
    %c0_i32_0 = arith.constant 0 : i32
    %c0_i32_1 = arith.constant 0 : i32
    %c0_i32_2 = arith.constant 0 : i32
    return %c0_i32, %c0_i32_0, %c0_i32_1 : i32, i32, i32
  }
  func.func @transform_2(%arg0: i32) -> (i32, i32, i32) {
    %c0_i32 = arith.constant 0 : i32
    %c0_i32_0 = arith.constant 0 : i32
    %c0_i32_1 = arith.constant 0 : i32
    %c0_i32_2 = arith.constant 0 : i32
    return %c0_i32, %c0_i32_0, %c0_i32_1 : i32, i32, i32
  }
  func.func @transform_3(%arg0: i32) -> (i32, i32) {
    %c0_i32 = arith.constant 0 : i32
    %c0_i32_0 = arith.constant 0 : i32
    return %arg0, %c0_i32 : i32, i32
  }
}

</mosaic_0001>

<bundles_post_ra>
// kernel: tpu_custom_call.1
= control target key start
LH: loop header
LB: loop body
LE: loop exit
PB: predicated region body
PF: predicated region fallthrough
CT: control target
= control target key end

     0   :  { %8 = vsyncpa [#allocation3], 0  ;;  %s1964_s0 = inlined_call_operand.hbm [shape: bf16[256,128], index: 0, kind: input, shape index: {}]   ;;  %s1965_s1 = inlined_call_operand.hbm [shape: bf16[4,128,128], index: 1, kind: input, shape index: {}]   ;;  %s1966_s2 = inlined_call_operand.hbm [shape: f32[4,1,128], index: 2, kind: input, shape index: {}]   ;;  %s1967_s3 = inlined_call_operand.hbm [shape: f32[256,128], index: 3, kind: output, shape index: {}]  }
   0x1   :  { %10 = vsyncpa [#allocation3 + $0x1], 0 }
   0x2   :  { %11 = vsyncpa [#allocation6], 0 }
   0x3   :  { %12 = vsyncpa [#allocation4], 0 }
   0x4   :  { %14 = vsyncpa [#allocation4 + $0x1], 0  ;;  %s1722_s12 = smov 0   ;;  %s1724_s13 = smov 0  }
   0x5   :  { %s1726_s14 = smov 0   ;;  %s1728_s15 = smov 0  }
   0x6 LB: > { %s1743_s16 = sadd.s32 4294967295, %s1690_s15   ;;  %s1173_s17 = sadd.s32 4294967294, %s1690_s15   ;;  %s1690_s15 = sphi %s1728_s15, %s1988_s15   ;;  %s1686_s14 = sphi %s1726_s14, %s1987_s14   ;;  %s1682_s13 = sphi %s1724_s13, %s1986_s13   ;;  %s1678_s12 = sphi %s1722_s12, %s1985_s12  }
   0x7   : > { %p40_p0 = scmp.ne.s32.totalorder %s1682_s13, %s1678_s12  ;;  %p1968_p1 = scmp.eq.s32.totalorder %s1743_s16, 0 }
   0x8   : > { %p106_p2 = scmp.eq.s32.totalorder %s1743_s16, 1  ;;  %p112_p3 = scmp.eq.s32.totalorder %s1173_s17, 1 }
   0x9   : > { %p1752_p4 = por %p1968_p1, %p40_p0  ;;  %p1174_p5 = scmp.ge.s32.totalorder %s1690_s15, 1 }
   0xa   : > { %p1757_p6 = por %p112_p3, %p40_p0  ;;  %p119_p7 = scmp.lt.s32.totalorder %s1690_s15, 3 }
   0xb   : > { %s1972_s18 = scalar_select %p1752_p4, 1, 0 }
   0xc   : > { %s1973_s19 = scalar_select %p1757_p6, 1, 0 }
   0xd   : > { %p1762_p8 = pnand %p1174_p5, %p119_p7  ;;  %s1692_s21 = smov [#allocation5]  }
   0xe   : > { %s131_s22 = sshll.u32 %s1692_s21, 4  ;;  %s1693_s24 = smov [#allocation7]   ;;  %s132_s22 = int_to_ptr.vmem [resolvable:$true] %s131_s22 }
   0xf   : > { %s1974_s20 = scalar_select %p1762_p8, 1, 0 }
  0x10   : > { %p1441_p9 = pneg %p1762_p8  ;;  %s144_s25 = sshll.u32 %s1693_s24, 4  ;;  %s145_s25 = int_to_ptr.vmem [resolvable:$true] %s144_s25 }
  0x11   : > { %s1553_s26 = scalar_lea.vmem %s132_s22, 4096  ;;  %p1561_p5 = scmp.lt.s32.totalorder %s132_s22, %s132_s22 }
  0x12   : > { %p1771_p11 = pnand %p1441_p9, %p1968_p1  ;;  %p1554_p13 = scmp.ne.s32.totalorder %s132_s22, %s1553_s26 }
  0x13   : > { %p1562_p7 = scmp.lt.s32.totalorder %s1553_s26, %s1553_s26 }
  0x14   : > { %p1544_p12 = pneg %p1771_p11 }
  0x15   : > { %p1563_p10 = por %p1562_p7, %p1561_p5 }
  0x16   : > { %p1556_p0 = pnand %p1554_p13, %p1544_p12 }
  0x18   : > { %p1557_p3 = pneg %p1556_p0 }
  0x1a   : > { %p1564_p9 = pnand %p1563_p10, %p1557_p3 }
  0x1c   : > { %1567 = shalt.err (!%p1564_p9)
}
  0x1d   : > { %s1694_s27 = smov 64   ;;  %s1695_s28 = smov 4  }
  0x1e   : > { %1444 = dma.hbm_to_vmem [thread:$0]  (!%p1771_p11), %s1965_s1, 4096, %s132_s22, [#allocation6], %s1694_s27, %s1694_s27, %s1695_s28  }
  0x1f   : > { %s1579_s4 = scalar_lea.vmem %s145_s25, 64  ;;  %p1587_p10 = scmp.lt.s32.totalorder %s145_s25, %s145_s25 }
  0x20   : > { %p1580_p13 = scmp.ne.s32.totalorder %s145_s25, %s1579_s4  ;;  %p1588_p3 = scmp.lt.s32.totalorder %s1579_s4, %s1579_s4 }
  0x22   : > { %p1582_p0 = pnand %p1580_p13, %p1544_p12  ;;  %p1589_p7 = por %p1588_p3, %p1587_p10 }
  0x24   : > { %p1583_p5 = pneg %p1582_p0 }
  0x26   : > { %p1590_p9 = pnand %p1589_p7, %p1583_p5 }
  0x28   : > { %1593 = shalt.err (!%p1590_p9)
}
  0x29   : > { %s1696_s5 = smov 16   ;;  %s1697_s6 = smov 1  }
  0x2a   : > { %1447 = dma.hbm_to_vmem [thread:$0]  (!%p1771_p11), %s1966_s2, 64, %s145_s25, [#allocation6], %s1696_s5, %s1696_s5, %s1697_s6  }
  0x2b   : > { %s1797_s9 = sadd.s32 1, %s1690_s15   ;;  %s27_s11 = sadd.s32 1, %s1686_s14 }
  0x2c   : > { %s24_s10 = ssub.s32 %s1690_s15, %s1797_s9  ;;  %p34_p13 = scmp.ne.s32.totalorder %s1686_s14, %s1682_s13 }
  0x2d   : > { %p25_p12 = scmp.eq.s32.totalorder %s24_s10, 0  ;;  %p35_p0 = scmp.eq.s32.totalorder %s1690_s15, 0 }
  0x2e   : > { %p1810_p10 = por %p106_p2, %p34_p13  ;;  %p1458_p3 = scmp.lt.s32.totalorder %s1690_s15, 2 }
  0x2f   : > { %s1806_s17 = scalar_select %p25_p12, %s1686_s14, %s27_s11  }
  0x30   : > { %p36_p5 = por %p35_p0, %p34_p13  ;;  %s158_s22 = sand.u32 1, %s1686_s14  }
  0x31   : > { %s1976_s21 = scalar_select %p1810_p10, 1, 0 }
  0x32   : > { %s1178_s23 = sshll.u32 %s158_s22, 6  ;;  %s1235_s24 = sshll.u32 %s1690_s15, 10 }
  0x33   : > { %s1820_s29 = scalar_lea.hbm %s1964_s0, %s1235_s24  ;;  %s162_s30 = scalar_lea.vmem [#allocation2], %s1178_s23 }
  0x34   : > { %s169_s4 = sshll.u32 %s162_s30, 4  ;;  %p1824_p2 = pnand %p1458_p3, %p36_p5  ;;  %s1822_s4 = int_to_ptr.vmem [resolvable:$true] %s169_s4 }
  0x35   : > { %s1828_s6 = scalar_lea.sflag [#allocation3], %s158_s22  ;;  %s1594_s7 = scalar_lea.hbm %s1820_s29, 1024 }
  0x36   : > { %p1595_p11 = scmp.ne.s32.totalorder %s1820_s29, %s1594_s7  ;;  %p1596_p7 = pneg %p1824_p2 }
  0x37   : > { %s1599_s11 = scalar_lea.hbm %s1964_s0, 2048  ;;  %p1600_p13 = scmp.lt.s32.totalorder %s1820_s29, %s1964_s0 }
  0x38   : > { %p1597_p9 = pnand %p1596_p7, %p1595_p11  ;;  %p1601_p0 = scmp.lt.s32.totalorder %s1599_s11, %s1594_s7 }
  0x3a   : > { %p1598_p12 = pneg %p1597_p9  ;;  %p1602_p5 = por %p1601_p0, %p1600_p13 }
  0x3c   : > { %p1603_p3 = pnand %p1602_p5, %p1598_p12 }
  0x3e   : > { %1606 = shalt.err (!%p1603_p3)
}
  0x3f   : > { %s1607_s22 = scalar_lea.vmem %s1822_s4, 1024  ;;  %s1698_s25 = smov [#allocation2]  }
  0x40   : > { %p1608_p1 = scmp.ne.s32.totalorder %s1822_s4, %s1607_s22  ;;  %s1612_s26 = sshll.u32 %s1698_s25, 4  ;;  %s1613_s26 = int_to_ptr.vmem [resolvable:$false] %s1612_s26 }
  0x41   : > { %s1614_s30 = scalar_lea.vmem %s1613_s26, 2048  ;;  %p1615_p9 = scmp.lt.s32.totalorder %s1822_s4, %s1613_s26 }
  0x42   : > { %p1610_p6 = pnand %p1608_p1, %p1596_p7  ;;  %p1616_p10 = scmp.lt.s32.totalorder %s1614_s30, %s1607_s22 }
  0x44   : > { %p1611_p11 = pneg %p1610_p6  ;;  %p1617_p4 = por %p1616_p10, %p1615_p9 }
  0x46   : > { %p1618_p8 = pnand %p1617_p4, %p1611_p11 }
  0x48   : > { %1621 = shalt.err (!%p1618_p8)
}
  0x49   : > { %1451 = dma.hbm_to_vmem [thread:$0]  (!%p1824_p2), %s1820_s29, 1024, %s1822_s4, %s1828_s6, %s1694_s27, %s1694_s27, %s1695_s28  }
  0x4a   : > { %p1978_p1 = scmp.ne.s32.totalorder %s1974_s20, 0 }
  0x4b   : > { %s1855_s7 = sand.u32 (!%p1978_p1), 1, %s1682_s13   ;;  %p1979_p4 = scmp.ne.s32.totalorder (!%p1978_p1), %s1972_s18, 0 }
  0x4c   : > { %181 = sbr.rel (%p1978_p1) target bundleno = 977 (0x3d1), region = 32  ;;  %s1182_s8 = sshll.u32 (!%p1978_p1), %s1855_s7, 6 }
  0x4d   : > { %s184_s10 = scalar_lea.sflag (!%p1978_p1), [#allocation3], %s1855_s7  ;;  %s1859_s11 = scalar_lea.vmem (!%p1978_p1), [#allocation2], %s1182_s8 }
  0x51   : > { %1665 = dma.done.wait (%p1979_p4), %s184_s10, 1024  }
  0x52   : > { %1667 = vsyncadd (%p1979_p4), %s184_s10, 4294966272  ;;  %p1980_p6 = scmp.eq.s32.totalorder %s1743_s16, 0 }
  0x54   : > { %1669 = dma.done.wait (%p1980_p6), [#allocation6], 4160   ;;  %p1981_p8 = pmov %p1980_p6 }
  0x55   : > { %v1502_v0 = vld [vmem:[#allocation5 + $0x38] sm:$0xff]   ;;  %v1503_v1 = vld [vmem:[#allocation5 + $0x30] sm:$0xff]   ;;  %v1504_v2 = vld [vmem:[#allocation5 + $0x28] sm:$0xff]   ;;  %s1185_s18 = sshll.u32 %s1855_s7, 7  ;;  %s1236_s27 = sshll.u32 %s1743_s16, 11 }
  0x56   : > { %1671 = vsyncadd (%p1981_p8), [#allocation6], 4294963136  ;;  %1301 = vmatprep.subr.bf16.mxu0 %v1502_v0  ;;  %v1505_v3 = vld [vmem:[#allocation5 + $0x20] sm:$0xff]   ;;  %v1506_v5 = vld [vmem:[#allocation5 + $0x18] sm:$0xff]   ;;  %s1882_s20 = scalar_lea.vmem [#allocation8], %s1185_s18  ;;  %s1917_s5 = scalar_lea.hbm %s1967_s3, %s1236_s27 }
  0x57   : > { %1302 = vmatpush3.bf16.msra.mxu0 %v1502_v0  ;;  %v1510_v4 = vld [vmem:[%s1859_s11] sm:$0xff]   ;;  %v1507_v6 = vld [vmem:[#allocation5 + $0x10] sm:$0xff]   ;;  %v1518_v7 = vld [vmem:[#allocation5 + $0x78] sm:$0xff]   ;;  %s1081_s28 = sshll.u32 %s1882_s20, 4  ;;  %s1068_s16 = scalar_lea.sflag [#allocation4], %s1855_s7  ;;  %s1919_s28 = int_to_ptr.vmem [resolvable:$true] %s1081_s28 }
  0x58   : > { %1303 = vmatprep.subr.bf16.mxu0 %v1503_v1  ;;  %1317 = vmatprep.mubr.bf16.mxu0 %v1510_v4  ;;  %v1519_v8 = vld [vmem:[#allocation5 + $0x70] sm:$0xff]   ;;  %v1508_v9 = vld [vmem:[#allocation5 + $0x8] sm:$0xff]   ;;  %v1509_v11 = vld [vmem:[#allocation5] sm:$0xff]   ;;  %s1622_s6 = scalar_lea.vmem %s1919_s28, 2048  ;;  %p1982_p2 = scmp.ne.s32.totalorder %s1976_s21, 0 }
  0x59   : > { %1333 = vmatprep.subr.bf16.mxu1 %v1518_v7  ;;  %v1520_v10 = vld [vmem:[#allocation5 + $0x68] sm:$0xff]   ;;  %v1521_v12 = vld [vmem:[#allocation5 + $0x60] sm:$0xff]   ;;  %v1522_v13 = vld [vmem:[#allocation5 + $0x58] sm:$0xff]   ;;  %p1623_p10 = scmp.ne.s32.totalorder %s1919_s28, %s1622_s6  ;;  %s1699_s23 = smov [#allocation8]  }
  0x5a   : > { %1334 = vmatpush3.bf16.msra.mxu1 %v1518_v7  ;;  %v1511_v14 = vld [vmem:[%s1859_s11 + $0x8] sm:$0xff]   ;;  %v1512_v15 = vld [vmem:[%s1859_s11 + $0x10] sm:$0xff]   ;;  %v1513_v16 = vld [vmem:[%s1859_s11 + $0x18] sm:$0xff]   ;;  %s1626_s24 = sshll.u32 %s1699_s23, 4  ;;  %s1627_s24 = int_to_ptr.vmem [resolvable:$false] %s1626_s24 }
  0x5b   : > { %1304 = vmatpush3.bf16.msra.mxu0 %v1503_v1  ;;  %1335 = vmatprep.subr.bf16.mxu1 %v1519_v8  ;;  %v1514_v17 = vld [vmem:[%s1859_s11 + $0x20] sm:$0xff]   ;;  %v1515_v18 = vld [vmem:[%s1859_s11 + $0x28] sm:$0xff]   ;;  %v1516_v19 = vld [vmem:[%s1859_s11 + $0x30] sm:$0xff]   ;;  %p1624_p7 = pnand %p1623_p10, %p1982_p2  ;;  %s1628_s22 = scalar_lea.vmem %s1627_s24, 4096 }
  0x5c   : > { %1305 = vmatprep.subr.bf16.mxu0 %v1504_v2  ;;  %v1517_v20 = vld [vmem:[%s1859_s11 + $0x38] sm:$0xff]   ;;  %v1523_v21 = vld [vmem:[#allocation5 + $0x50] sm:$0xff]   ;;  %v1524_v22 = vld [vmem:[#allocation5 + $0x48] sm:$0xff]   ;;  %p1629_p13 = scmp.lt.s32.totalorder %s1919_s28, %s1627_s24  ;;  %p1630_p0 = scmp.lt.s32.totalorder %s1628_s22, %s1622_s6 }
  0x5d   : > { %v1525_v23 = vld [vmem:[#allocation5 + $0x40] sm:$0xff]   ;;  %v1526_v24 = vld [vmem:[#allocation5 + $0xb8] sm:$0xff]   ;;  %v1527_v25 = vld [vmem:[#allocation5 + $0xb0] sm:$0xff]   ;;  %p1625_p12 = pneg %p1624_p7 }
  0x5e   : > { %1336 = vmatpush3.bf16.msra.mxu1 %v1519_v8  ;;  %v1528_v26 = vld [vmem:[#allocation5 + $0xa8] sm:$0xff]   ;;  %v1529_v27 = vld [vmem:[#allocation5 + $0xa0] sm:$0xff]   ;;  %v1530_v28 = vld [vmem:[#allocation5 + $0x98] sm:$0xff]   ;;  %p1631_p5 = por %p1630_p0, %p1629_p13 }
  0x5f   : > { %1306 = vmatpush3.bf16.msra.mxu0 %v1504_v2  ;;  %1337 = vmatprep.subr.bf16.mxu1 %v1520_v10  ;;  %v1186_v31 = vld [vmem:[#allocation7] ss:$0 sm:$0xff] }
  0x60   : > { %1307 = vmatprep.subr.bf16.mxu0 %v1505_v3  ;;  %p1632_p3 = pnand %p1631_p5, %p1625_p12 }
  0x62   : > { %1338 = vmatpush3.bf16.msra.mxu1 %v1520_v10 }
  0x63   : > { %1308 = vmatpush3.bf16.msra.mxu0 %v1505_v3  ;;  %1339 = vmatprep.subr.bf16.mxu1 %v1521_v12 }
  0x64   : > { %1309 = vmatprep.subr.bf16.mxu0 %v1506_v5 }
  0x66   : > { %1340 = vmatpush3.bf16.msra.mxu1 %v1521_v12 }
  0x67   : > { %1310 = vmatpush3.bf16.msra.mxu0 %v1506_v5  ;;  %1341 = vmatprep.subr.bf16.mxu1 %v1522_v13 }
  0x68   : > { %1311 = vmatprep.subr.bf16.mxu0 %v1507_v6 }
  0x6a   : > { %1342 = vmatpush3.bf16.msra.mxu1 %v1522_v13 }
  0x6b   : > { %1312 = vmatpush3.bf16.msra.mxu0 %v1507_v6  ;;  %1343 = vmatprep.subr.bf16.mxu1 %v1523_v21 }
  0x6c   : > { %1313 = vmatprep.subr.bf16.mxu0 %v1508_v9 }
  0x6e   : > { %1344 = vmatpush3.bf16.msra.mxu1 %v1523_v21 }
  0x6f   : > { %1314 = vmatpush3.bf16.msra.mxu0 %v1508_v9  ;;  %1345 = vmatprep.subr.bf16.mxu1 %v1524_v22 }
  0x70   : > { %1315 = vmatprep.subr.bf16.mxu0 %v1509_v11 }
  0x72   : > { %1346 = vmatpush3.bf16.msra.mxu1 %v1524_v22  ;;  %v1531_v22 = vld [vmem:[#allocation5 + $0x90] sm:$0xff]  }
  0x73   : > { %1316 = vmatpush3.bf16.msra.mxu0 %v1509_v11  ;;  %1347 = vmatprep.subr.bf16.mxu1 %v1525_v23 }
  0x74   : > { %1365 = vmatprep.subr.bf16.mxu0 %v1526_v24 }
  0x76   : > { %1318 = vmatmul.mubr.bf16.vlgmr.msra.gmra.mxu0 %v1511_v14  ;;  %1348 = vmatpush3.bf16.msra.mxu1 %v1525_v23  ;;  %v1532_v23 = vld [vmem:[#allocation5 + $0x88] sm:$0xff]  }
  0x77   : > { %1321 = vmatprep.mubr.bf16.mxu0 %v1512_v15  ;;  %1366 = vmatpush3.bf16.msra.mxu0 %v1526_v24  ;;  %v1533_v24 = vld [vmem:[#allocation5 + $0x80] sm:$0xff]  }
  0x78   : > { %1367 = vmatprep.subr.bf16.mxu0 %v1527_v25 }
  0x7b   : > { %1368 = vmatpush3.bf16.msra.mxu0 %v1527_v25  ;;  %v1534_v25 = vld [vmem:[#allocation5 + $0xf8] sm:$0xff]  }
  0x7c   : > { %1369 = vmatprep.subr.bf16.mxu0 %v1528_v26  ;;  %1397 = vmatprep.subr.bf16.mxu1 %v1534_v25 }
  0x7e   : > { %1322 = vmatmul.mubr.bf16.gmra.mxu0 %v1513_v16 }
  0x7f   : > { %1325 = vmatprep.mubr.bf16.mxu0 %v1514_v17  ;;  %1370 = vmatpush3.bf16.msra.mxu0 %v1528_v26  ;;  %v1535_v26 = vld [vmem:[#allocation5 + $0xf0] sm:$0xff]  }
  0x80   : > { %1371 = vmatprep.subr.bf16.mxu0 %v1529_v27 }
  0x83   : > { %1372 = vmatpush3.bf16.msra.mxu0 %v1529_v27  ;;  %v1536_v27 = vld [vmem:[#allocation5 + $0xe8] sm:$0xff]  }
  0x84   : > { %1373 = vmatprep.subr.bf16.mxu0 %v1530_v28 }
  0x86   : > { %1326 = vmatmul.mubr.bf16.gmra.mxu0 %v1515_v18 }
  0x87   : > { %1329 = vmatprep.mubr.bf16.mxu0 %v1516_v19  ;;  %1374 = vmatpush3.bf16.msra.mxu0 %v1530_v28  ;;  %v1537_v28 = vld [vmem:[#allocation5 + $0xe0] sm:$0xff]  }
  0x88   : > { %1375 = vmatprep.subr.bf16.mxu0 %v1531_v22 }
  0x8b   : > { %1376 = vmatpush3.bf16.msra.mxu0 %v1531_v22 }
  0x8c   : > { %1377 = vmatprep.subr.bf16.mxu0 %v1532_v23 }
  0x8e   : > { %1330 = vmatmul.mubr.bf16.gmra.mxu0 %v1517_v20 }
  0x8f   : > { %1378 = vmatpush3.bf16.msra.mxu0 %v1532_v23  ;;  %v1539_v23 = vld [vmem:[#allocation5 + $0xd0] sm:$0xff]  }
  0x90   : > { %1379 = vmatprep.subr.bf16.mxu0 %v1533_v24 }
  0x93   : > { %1380 = vmatpush3.bf16.msra.mxu0 %v1533_v24  ;;  %v1540_v24 = vld [vmem:[#allocation5 + $0xc8] sm:$0xff]  }
 0x136   : > { %v1319_v29 = vpop.f32.mrf.mxu0 }
 0x137   : > { %v399_v35 = vadd.f32 %v1319_v29, %v1186_v31  ;;  %v1538_v29 = vld [vmem:[#allocation5 + $0xd8] sm:$0xff]  }
 0x138   : > { %v390_v30 = vpop.f32.mrf.mxu0 }
 0x139   : > { %v391_v33 = vadd.f32 %v1186_v31, %v390_v30  ;;  %v455_v42 = vmax.f32 %v399_v35, 0.0 }
 0x13a   : > { %v1320_v32 = vpop.f32.mrf.mxu0 }
 0x13b   : > { %v402_v34 = vadd.f32 %v1320_v32, %v1186_v31  ;;  %v453_v40 = vmax.f32 %v391_v33, 0.0  ;;  %v1203_v32 = vld [vmem:[#allocation7 + $0x1] ss:$0 sm:$0xff] }
 0x13c   : > { %v393_v36 = vpop.f32.mrf.mxu0 }
 0x13d   : > { %v394_v37 = vadd.f32 %v1186_v31, %v393_v36  ;;  %v456_v38 = vmax.f32 %v402_v34, 0.0 }
 0x13e   : > { %v1323_v39 = vpop.f32.mrf.mxu0 }
 0x13f   : > { %v454_v41 = vmax.f32 %v394_v37, 0.0  ;;  %v470_v45 = vpack.c.bf16 %v456_v38, %v455_v42  ;;  %v415_v49 = vadd.f32 %v1323_v39, %v1186_v31 }
 0x140   : > { %v406_v43 = vpop.f32.mrf.mxu0 }
 0x141   : > { %v469_v44 = vpack.c.bf16 %v454_v41, %v453_v40  ;;  %v407_v47 = vadd.f32 %v1186_v31, %v406_v43  ;;  %v459_v56 = vmax.f32 %v415_v49, 0.0 }
 0x142   : > { %v1324_v46 = vpop.f32.mrf.mxu0 }
 0x143   : > { %v418_v48 = vadd.f32 %v1324_v46, %v1186_v31  ;;  %1349 = vmatprep.mubr.bf16.mxu1 %v469_v44  ;;  %v457_v54 = vmax.f32 %v407_v47, 0.0 }
 0x144   : > { %v409_v50 = vpop.f32.mrf.mxu0  ;;  %1350 = vmatmul.mubr.bf16.vlgmr.msra.gmra.mxu1 %v470_v45 }
 0x145   : > { %v410_v51 = vadd.f32 %v1186_v31, %v409_v50  ;;  %v460_v52 = vmax.f32 %v418_v48, 0.0  ;;  %1398 = vmatpush3.bf16.msra.mxu1 %v1534_v25  ;;  %v1541_v25 = vld [vmem:[#allocation5 + $0xc0] sm:$0xff]  }
 0x146   : > { %v1327_v53 = vpop.f32.mrf.mxu0  ;;  %1399 = vmatprep.subr.bf16.mxu1 %v1535_v26 }
 0x147   : > { %v458_v55 = vmax.f32 %v410_v51, 0.0  ;;  %v472_v59 = vpack.c.bf16 %v460_v52, %v459_v56  ;;  %v431_v63 = vadd.f32 %v1327_v53, %v1186_v31 }
 0x148   : > { %v422_v57 = vpop.f32.mrf.mxu0 }
 0x149   : > { %v471_v58 = vpack.c.bf16 %v458_v55, %v457_v54  ;;  %v423_v61 = vadd.f32 %v1186_v31, %v422_v57  ;;  %v463_v6 = vmax.f32 %v431_v63, 0.0  ;;  %1400 = vmatpush3.bf16.msra.mxu1 %v1535_v26 }
 0x14a   : > { %v1328_v60 = vpop.f32.mrf.mxu0  ;;  %1401 = vmatprep.subr.bf16.mxu1 %v1536_v27 }
 0x14b   : > { %v434_v62 = vadd.f32 %v1328_v60, %v1186_v31  ;;  %1353 = vmatprep.mubr.bf16.mxu1 %v471_v58  ;;  %v461_v4 = vmax.f32 %v423_v61, 0.0 }
 0x14c   : > { %v425_v0 = vpop.f32.mrf.mxu0  ;;  %1354 = vmatmul.mubr.bf16.gmra.mxu1 %v472_v59 }
 0x14d   : > { %v426_v1 = vadd.f32 %v1186_v31, %v425_v0  ;;  %v464_v2 = vmax.f32 %v434_v62, 0.0  ;;  %1402 = vmatpush3.bf16.msra.mxu1 %v1536_v27 }
 0x14e   : > { %v1331_v3 = vpop.f32.mrf.mxu0  ;;  %1403 = vmatprep.subr.bf16.mxu1 %v1537_v28 }
 0x14f   : > { %v462_v5 = vmax.f32 %v426_v1, 0.0  ;;  %v474_v9 = vpack.c.bf16 %v464_v2, %v463_v6  ;;  %v447_v13 = vadd.f32 %v1331_v3, %v1186_v31 }
 0x150   : > { %v438_v7 = vpop.f32.mrf.mxu0 }
 0x151   : > { %v473_v8 = vpack.c.bf16 %v462_v5, %v461_v4  ;;  %v439_v11 = vadd.f32 %v1186_v31, %v438_v7  ;;  %v467_v19 = vmax.f32 %v447_v13, 0.0  ;;  %1404 = vmatpush3.bf16.msra.mxu1 %v1537_v28  ;;  %v1212_v28 = vld [vmem:[#allocation7 + $0x2] ss:$0 sm:$0xff] }
 0x152   : > { %v1332_v10 = vpop.f32.mrf.mxu0  ;;  %1405 = vmatprep.subr.bf16.mxu1 %v1538_v29 }
 0x153   : > { %v450_v12 = vadd.f32 %v1332_v10, %v1186_v31  ;;  %1357 = vmatprep.mubr.bf16.mxu1 %v473_v8  ;;  %v465_v17 = vmax.f32 %v439_v11, 0.0 }
 0x154   : > { %v441_v14 = vpop.f32.mrf.mxu0  ;;  %1358 = vmatmul.mubr.bf16.gmra.mxu1 %v474_v9 }
 0x155   : > { %v442_v15 = vadd.f32 %v1186_v31, %v441_v14  ;;  %v468_v16 = vmax.f32 %v450_v12, 0.0  ;;  %1406 = vmatpush3.bf16.msra.mxu1 %v1538_v29 }
 0x156   : > { %1407 = vmatprep.subr.bf16.mxu1 %v1539_v23 }
 0x157   : > { %v466_v18 = vmax.f32 %v442_v15, 0.0  ;;  %v476_v21 = vpack.c.bf16 %v468_v16, %v467_v19 }
 0x159   : > { %v475_v20 = vpack.c.bf16 %v466_v18, %v465_v17  ;;  %1408 = vmatpush3.bf16.msra.mxu1 %v1539_v23 }
 0x15a   : > { %1409 = vmatprep.subr.bf16.mxu1 %v1540_v24 }
 0x15b   : > { %1361 = vmatprep.mubr.bf16.mxu1 %v475_v20 }
 0x15c   : > { %1362 = vmatmul.mubr.bf16.gmra.mxu1 %v476_v21 }
 0x15d   : > { %1410 = vmatpush3.bf16.msra.mxu1 %v1540_v24 }
 0x15e   : > { %1411 = vmatprep.subr.bf16.mxu1 %v1541_v25 }
 0x161   : > { %1412 = vmatpush3.bf16.msra.mxu1 %v1541_v25 }
 0x204   : > { %v1351_v30 = vpop.f32.mrf.mxu1 }
 0x205   : > { %v593_v36 = vadd.f32 %v1351_v30, %v1203_v32 }
 0x206   : > { %v584_v31 = vpop.f32.mrf.mxu1 }
 0x207   : > { %v585_v34 = vadd.f32 %v1203_v32, %v584_v31  ;;  %v649_v43 = vmax.f32 %v593_v36, 0.0 }
 0x208   : > { %v1352_v33 = vpop.f32.mrf.mxu1 }
 0x209   : > { %v596_v35 = vadd.f32 %v1352_v33, %v1203_v32  ;;  %v647_v41 = vmax.f32 %v585_v34, 0.0 }
 0x20a   : > { %v587_v37 = vpop.f32.mrf.mxu1 }
 0x20b   : > { %v588_v38 = vadd.f32 %v1203_v32, %v587_v37  ;;  %v650_v39 = vmax.f32 %v596_v35, 0.0 }
 0x20c   : > { %v1355_v40 = vpop.f32.mrf.mxu1 }
 0x20d   : > { %v648_v42 = vmax.f32 %v588_v38, 0.0  ;;  %v664_v46 = vpack.c.bf16 %v650_v39, %v649_v43  ;;  %v609_v50 = vadd.f32 %v1355_v40, %v1203_v32 }
 0x20e   : > { %v600_v44 = vpop.f32.mrf.mxu1 }
 0x20f   : > { %v663_v45 = vpack.c.bf16 %v648_v42, %v647_v41  ;;  %v601_v48 = vadd.f32 %v1203_v32, %v600_v44  ;;  %v653_v57 = vmax.f32 %v609_v50, 0.0 }
 0x210   : > { %v1356_v47 = vpop.f32.mrf.mxu1 }
 0x211   : > { %v612_v49 = vadd.f32 %v1356_v47, %v1203_v32  ;;  %1381 = vmatprep.mubr.bf16.mxu0 %v663_v45  ;;  %v651_v55 = vmax.f32 %v601_v48, 0.0 }
 0x212   : > { %v603_v51 = vpop.f32.mrf.mxu1  ;;  %1382 = vmatmul.mubr.bf16.vlgmr.msra.gmra.mxu0 %v664_v46 }
 0x213   : > { %v604_v52 = vadd.f32 %v1203_v32, %v603_v51  ;;  %v654_v53 = vmax.f32 %v612_v49, 0.0 }
 0x214   : > { %v1359_v54 = vpop.f32.mrf.mxu1 }
 0x215   : > { %v652_v56 = vmax.f32 %v604_v52, 0.0  ;;  %v666_v60 = vpack.c.bf16 %v654_v53, %v653_v57  ;;  %v625_v0 = vadd.f32 %v1359_v54, %v1203_v32 }
 0x216   : > { %v616_v58 = vpop.f32.mrf.mxu1 }
 0x217   : > { %v665_v59 = vpack.c.bf16 %v652_v56, %v651_v55  ;;  %v617_v62 = vadd.f32 %v1203_v32, %v616_v58  ;;  %v657_v7 = vmax.f32 %v625_v0, 0.0 }
 0x218   : > { %v1360_v61 = vpop.f32.mrf.mxu1 }
 0x219   : > { %v628_v63 = vadd.f32 %v1360_v61, %v1203_v32  ;;  %1385 = vmatprep.mubr.bf16.mxu0 %v665_v59  ;;  %v655_v5 = vmax.f32 %v617_v62, 0.0 }
 0x21a   : > { %v619_v1 = vpop.f32.mrf.mxu1  ;;  %1386 = vmatmul.mubr.bf16.gmra.mxu0 %v666_v60 }
 0x21b   : > { %v620_v2 = vadd.f32 %v1203_v32, %v619_v1  ;;  %v658_v3 = vmax.f32 %v628_v63, 0.0 }
 0x21c   : > { %v1363_v4 = vpop.f32.mrf.mxu1 }
 0x21d   : > { %v656_v6 = vmax.f32 %v620_v2, 0.0  ;;  %v668_v10 = vpack.c.bf16 %v658_v3, %v657_v7  ;;  %v641_v14 = vadd.f32 %v1363_v4, %v1203_v32 }
 0x21e   : > { %v632_v8 = vpop.f32.mrf.mxu1 }
 0x21f   : > { %v667_v9 = vpack.c.bf16 %v656_v6, %v655_v5  ;;  %v633_v12 = vadd.f32 %v1203_v32, %v632_v8  ;;  %v661_v20 = vmax.f32 %v641_v14, 0.0 }
 0x220   : > { %v1364_v11 = vpop.f32.mrf.mxu1 }
 0x221   : > { %v644_v13 = vadd.f32 %v1364_v11, %v1203_v32  ;;  %1389 = vmatprep.mubr.bf16.mxu0 %v667_v9  ;;  %v659_v18 = vmax.f32 %v633_v12, 0.0 }
 0x222   : > { %v635_v15 = vpop.f32.mrf.mxu1  ;;  %1390 = vmatmul.mubr.bf16.gmra.mxu0 %v668_v10 }
 0x223   : > { %v636_v16 = vadd.f32 %v1203_v32, %v635_v15  ;;  %v662_v17 = vmax.f32 %v644_v13, 0.0 }
 0x225   : > { %v660_v19 = vmax.f32 %v636_v16, 0.0  ;;  %v670_v22 = vpack.c.bf16 %v662_v17, %v661_v20 }
 0x227   : > { %v669_v21 = vpack.c.bf16 %v660_v19, %v659_v18  ;;  %v1877_v19 = vld [vmem:[#allocation7 + $0x3] ss:$0 sm:$0xff] }
 0x229   : > { %1393 = vmatprep.mubr.bf16.mxu0 %v669_v21 }
 0x22a   : > { %1394 = vmatmul.mubr.bf16.gmra.mxu0 %v670_v22 }
 0x2d2   : > { %v1383_v26 = vpop.f32.mrf.mxu0 }
 0x2d3   : > { %v787_v32 = vadd.f32 %v1383_v26, %v1212_v28 }
 0x2d4   : > { %v778_v27 = vpop.f32.mrf.mxu0 }
 0x2d5   : > { %v779_v30 = vadd.f32 %v1212_v28, %v778_v27  ;;  %v843_v39 = vmax.f32 %v787_v32, 0.0 }
 0x2d6   : > { %v1384_v29 = vpop.f32.mrf.mxu0 }
 0x2d7   : > { %v790_v31 = vadd.f32 %v1384_v29, %v1212_v28  ;;  %v841_v37 = vmax.f32 %v779_v30, 0.0 }
 0x2d8   : > { %v781_v33 = vpop.f32.mrf.mxu0 }
 0x2d9   : > { %v782_v34 = vadd.f32 %v1212_v28, %v781_v33  ;;  %v844_v35 = vmax.f32 %v790_v31, 0.0 }
 0x2da   : > { %v1387_v36 = vpop.f32.mrf.mxu0 }
 0x2db   : > { %v842_v38 = vmax.f32 %v782_v34, 0.0  ;;  %v858_v42 = vpack.c.bf16 %v844_v35, %v843_v39  ;;  %v803_v46 = vadd.f32 %v1387_v36, %v1212_v28 }
 0x2dc   : > { %v794_v40 = vpop.f32.mrf.mxu0 }
 0x2dd   : > { %v857_v41 = vpack.c.bf16 %v842_v38, %v841_v37  ;;  %v795_v44 = vadd.f32 %v1212_v28, %v794_v40  ;;  %v847_v53 = vmax.f32 %v803_v46, 0.0 }
 0x2de   : > { %v1388_v43 = vpop.f32.mrf.mxu0 }
 0x2df   : > { %v806_v45 = vadd.f32 %v1388_v43, %v1212_v28  ;;  %1413 = vmatprep.mubr.bf16.mxu1 %v857_v41  ;;  %v845_v51 = vmax.f32 %v795_v44, 0.0 }
 0x2e0   : > { %v797_v47 = vpop.f32.mrf.mxu0  ;;  %1414 = vmatmul.mubr.bf16.vlgmr.msra.gmra.mxu1 %v858_v42 }
 0x2e1   : > { %v798_v48 = vadd.f32 %v1212_v28, %v797_v47  ;;  %v848_v49 = vmax.f32 %v806_v45, 0.0 }
 0x2e2   : > { %v1391_v50 = vpop.f32.mrf.mxu0 }
 0x2e3   : > { %v846_v52 = vmax.f32 %v798_v48, 0.0  ;;  %v860_v56 = vpack.c.bf16 %v848_v49, %v847_v53  ;;  %v819_v60 = vadd.f32 %v1391_v50, %v1212_v28 }
 0x2e4   : > { %v810_v54 = vpop.f32.mrf.mxu0 }
 0x2e5   : > { %v859_v55 = vpack.c.bf16 %v846_v52, %v845_v51  ;;  %v811_v58 = vadd.f32 %v1212_v28, %v810_v54  ;;  %v851_v3 = vmax.f32 %v819_v60, 0.0 }
 0x2e6   : > { %v1392_v57 = vpop.f32.mrf.mxu0 }
 0x2e7   : > { %v822_v59 = vadd.f32 %v1392_v57, %v1212_v28  ;;  %1417 = vmatprep.mubr.bf16.mxu1 %v859_v55  ;;  %v849_v1 = vmax.f32 %v811_v58, 0.0 }
 0x2e8   : > { %v813_v61 = vpop.f32.mrf.mxu0  ;;  %1418 = vmatmul.mubr.bf16.gmra.mxu1 %v860_v56 }
 0x2e9   : > { %v814_v62 = vadd.f32 %v1212_v28, %v813_v61  ;;  %v852_v63 = vmax.f32 %v822_v59, 0.0 }
 0x2ea   : > { %v1395_v0 = vpop.f32.mrf.mxu0 }
 0x2eb   : > { %v850_v2 = vmax.f32 %v814_v62, 0.0  ;;  %v862_v6 = vpack.c.bf16 %v852_v63, %v851_v3  ;;  %v835_v10 = vadd.f32 %v1395_v0, %v1212_v28 }
 0x2ec   : > { %v826_v4 = vpop.f32.mrf.mxu0 }
 0x2ed   : > { %v861_v5 = vpack.c.bf16 %v850_v2, %v849_v1  ;;  %v827_v8 = vadd.f32 %v1212_v28, %v826_v4  ;;  %v855_v16 = vmax.f32 %v835_v10, 0.0 }
 0x2ee   : > { %v1396_v7 = vpop.f32.mrf.mxu0 }
 0x2ef   : > { %v838_v9 = vadd.f32 %v1396_v7, %v1212_v28  ;;  %1421 = vmatprep.mubr.bf16.mxu1 %v861_v5  ;;  %v853_v14 = vmax.f32 %v827_v8, 0.0 }
 0x2f0   : > { %v829_v11 = vpop.f32.mrf.mxu0  ;;  %1422 = vmatmul.mubr.bf16.gmra.mxu1 %v862_v6 }
 0x2f1   : > { %v830_v12 = vadd.f32 %v1212_v28, %v829_v11  ;;  %v856_v13 = vmax.f32 %v838_v9, 0.0 }
 0x2f3   : > { %v854_v15 = vmax.f32 %v830_v12, 0.0  ;;  %v864_v18 = vpack.c.bf16 %v856_v13, %v855_v16 }
 0x2f5   : > { %v863_v17 = vpack.c.bf16 %v854_v15, %v853_v14 }
 0x2f7   : > { %1425 = vmatprep.mubr.bf16.mxu1 %v863_v17 }
 0x2f8   : > { %1426 = vmatmul.mubr.bf16.gmra.mxu1 %v864_v18 }
 0x3a0   : > { %v1415_v20 = vpop.f32.mrf.mxu1 }
 0x3a1   : > { %v981_v21 = vadd.f32 %v1415_v20, %v1877_v19 }
 0x3a2   : > { %v972_v22 = vpop.f32.mrf.mxu1 }
 0x3a3   : > { %v1037_v23 = vmax.f32 %v981_v21, 0.0  ;;  %v973_v24 = vadd.f32 %v1877_v19, %v972_v22 }
 0x3a4   : > { %v1416_v25 = vpop.f32.mrf.mxu1 }
 0x3a5   : > { %1053 = vst [vmem:[%s1882_s20 + $0x10] sm:$0xff] %v1037_v23  ;;  %v1035_v26 = vmax.f32 %v973_v24, 0.0  ;;  %v984_v27 = vadd.f32 %v1416_v25, %v1877_v19 }
 0x3a6   : > { %v975_v28 = vpop.f32.mrf.mxu1 }
 0x3a7   : > { %1051 = vst [vmem:[%s1882_s20] sm:$0xff] %v1035_v26  ;;  %v1038_v29 = vmax.f32 %v984_v27, 0.0  ;;  %v976_v30 = vadd.f32 %v1877_v19, %v975_v28 }
 0x3a8   : > { %v1419_v31 = vpop.f32.mrf.mxu1 }
 0x3a9   : > { %1054 = vst [vmem:[%s1882_s20 + $0x18] sm:$0xff] %v1038_v29  ;;  %v1036_v32 = vmax.f32 %v976_v30, 0.0  ;;  %v997_v33 = vadd.f32 %v1419_v31, %v1877_v19 }
 0x3aa   : > { %v988_v34 = vpop.f32.mrf.mxu1 }
 0x3ab   : > { %1052 = vst [vmem:[%s1882_s20 + $0x8] sm:$0xff] %v1036_v32  ;;  %v1041_v35 = vmax.f32 %v997_v33, 0.0  ;;  %v989_v36 = vadd.f32 %v1877_v19, %v988_v34 }
 0x3ac   : > { %v1420_v37 = vpop.f32.mrf.mxu1 }
 0x3ad   : > { %1057 = vst [vmem:[%s1882_s20 + $0x30] sm:$0xff] %v1041_v35  ;;  %v1039_v38 = vmax.f32 %v989_v36, 0.0  ;;  %v1000_v39 = vadd.f32 %v1420_v37, %v1877_v19 }
 0x3ae   : > { %v991_v40 = vpop.f32.mrf.mxu1 }
 0x3af   : > { %1055 = vst [vmem:[%s1882_s20 + $0x20] sm:$0xff] %v1039_v38  ;;  %v1042_v41 = vmax.f32 %v1000_v39, 0.0  ;;  %v992_v42 = vadd.f32 %v1877_v19, %v991_v40 }
 0x3b0   : > { %v1423_v43 = vpop.f32.mrf.mxu1 }
 0x3b1   : > { %1058 = vst [vmem:[%s1882_s20 + $0x38] sm:$0xff] %v1042_v41  ;;  %v1040_v44 = vmax.f32 %v992_v42, 0.0  ;;  %v1013_v45 = vadd.f32 %v1423_v43, %v1877_v19 }
 0x3b2   : > { %v1004_v46 = vpop.f32.mrf.mxu1 }
 0x3b3   : > { %1056 = vst [vmem:[%s1882_s20 + $0x28] sm:$0xff] %v1040_v44  ;;  %v1045_v47 = vmax.f32 %v1013_v45, 0.0  ;;  %v1005_v48 = vadd.f32 %v1877_v19, %v1004_v46 }
 0x3b4   : > { %v1424_v49 = vpop.f32.mrf.mxu1 }
 0x3b5   : > { %1061 = vst [vmem:[%s1882_s20 + $0x50] sm:$0xff] %v1045_v47  ;;  %v1043_v50 = vmax.f32 %v1005_v48, 0.0  ;;  %v1016_v51 = vadd.f32 %v1424_v49, %v1877_v19 }
 0x3b6   : > { %v1007_v52 = vpop.f32.mrf.mxu1 }
 0x3b7   : > { %1059 = vst [vmem:[%s1882_s20 + $0x40] sm:$0xff] %v1043_v50  ;;  %v1046_v53 = vmax.f32 %v1016_v51, 0.0  ;;  %v1008_v54 = vadd.f32 %v1877_v19, %v1007_v52 }
 0x3b8   : > { %v1427_v55 = vpop.f32.mrf.mxu1 }
 0x3b9   : > { %1062 = vst [vmem:[%s1882_s20 + $0x58] sm:$0xff] %v1046_v53  ;;  %v1044_v56 = vmax.f32 %v1008_v54, 0.0  ;;  %v1029_v57 = vadd.f32 %v1427_v55, %v1877_v19 }
 0x3ba   : > { %v1020_v58 = vpop.f32.mrf.mxu1 }
 0x3bb   : > { %1060 = vst [vmem:[%s1882_s20 + $0x48] sm:$0xff] %v1044_v56  ;;  %v1049_v59 = vmax.f32 %v1029_v57, 0.0  ;;  %v1021_v60 = vadd.f32 %v1877_v19, %v1020_v58 }
 0x3bc   : > { %v1428_v61 = vpop.f32.mrf.mxu1 }
 0x3bd   : > { %1065 = vst [vmem:[%s1882_s20 + $0x70] sm:$0xff] %v1049_v59  ;;  %v1047_v62 = vmax.f32 %v1021_v60, 0.0  ;;  %v1032_v63 = vadd.f32 %v1428_v61, %v1877_v19 }
 0x3be   : > { %v1023_v0 = vpop.f32.mrf.mxu1 }
 0x3bf   : > { %1063 = vst [vmem:[%s1882_s20 + $0x60] sm:$0xff] %v1047_v62  ;;  %v1050_v1 = vmax.f32 %v1032_v63, 0.0  ;;  %v1024_v2 = vadd.f32 %v1877_v19, %v1023_v0 }
 0x3c1   : > { %1066 = vst [vmem:[%s1882_s20 + $0x78] sm:$0xff] %v1050_v1  ;;  %v1048_v3 = vmax.f32 %v1024_v2, 0.0 }
 0x3c3   : > { %1064 = vst [vmem:[%s1882_s20 + $0x68] sm:$0xff] %v1048_v3 }
 0x3c4   : > { %1635 = shalt.err (!%p1632_p3)
}
 0x3c5   : > { %s1636_s25 = scalar_lea.hbm %s1917_s5, 2048  ;;  %s1640_s8 = scalar_lea.hbm %s1967_s3, 4096 }
 0x3c6   : > { %p1637_p11 = scmp.ne.s32.totalorder %s1917_s5, %s1636_s25  ;;  %p1641_p4 = scmp.lt.s32.totalorder %s1917_s5, %s1967_s3 }
 0x3c7   : > { %p1642_p6 = scmp.lt.s32.totalorder %s1640_s8, %s1636_s25 }
 0x3c8   : > { %p1638_p9 = pnand %p1637_p11, %p1982_p2 }
 0x3c9   : > { %p1643_p8 = por %p1642_p6, %p1641_p4 }
 0x3ca   : > { %p1639_p1 = pneg %p1638_p9 }
 0x3cc   : > { %p1644_p10 = pnand %p1643_p8, %p1639_p1 }
 0x3ce   : > { %1647 = shalt.err (!%p1644_p10)
}
 0x3cf   : > { %s1700_s18 = smov 128   ;;  %s1701_s20 = smov 8  }
 0x3d0   : > { %1439 = dma.vmem_to_hbm [thread:$0]  (%p1982_p2), %s1919_s28, 2048, %s1917_s5, %s1068_s16, %s1700_s18, %s1700_s18, %s1701_s20  }
 0x3d1 PF: > { %s1096_s27 = sand.u32 1, %s1678_s12   ;;  %p1983_p7 = scmp.ne.s32.totalorder %s1973_s19, 0 }
 0x3d2   : > { %p1984_p12 = scmp.ge.s32.totalorder %s1690_s15, 2  ;;  %s1097_s29 = scalar_lea.sflag [#allocation4], %s1096_s27 }
 0x3d4   : > { %p1453_p13 = pnand %p1984_p12, %p1983_p7 }
 0x3d6   : > { %p1454_p0 = pneg %p1453_p13 }
 0x3d8   : > { %1673 = dma.done.wait (%p1454_p0), %s1097_s29, 2048  }
 0x3d9   : > { %1675 = vsyncadd (%p1454_p0), %s1097_s29, 4294965248  ;;  %p17_p5 = scmp.ge.s32.totalorder %s1797_s9, 4   ;;  %s1985_s12 = smov %s1682_s13 }
 0x3da   : > { %s1986_s13 = smov %s1686_s14  ;;  %s1987_s14 = smov %s1806_s17 }
 0x3db   : > { %s1988_s15 = smov %s1797_s9  ;;  %19 = sbr.rel (!%p17_p5) target bundleno = 6 (0x6), region = 91 }
 0x3e0   :  { %1102 = vsyncpa [#allocation3], 1 }
 0x3e1   :  { %1104 = vsyncpa [#allocation3 + $0x1], 1 }
 0x3e2   :  { %1105 = vsyncpa [#allocation6], 1 }
 0x3e3   :  { %1106 = vsyncpa [#allocation4], 1 }
 0x3e4   :  { %1108 = vsyncpa [#allocation4 + $0x1], 1 }

</bundles_post_ra>
